<compile_context>
chip_gen: v5e
topology: v5e:2x2
jax: 0.10.0
libtpu: 0.0.40
codegen_flags: <defaults>
</compile_context>

<pallas_src>
import functools

import jax
import jax.numpy as jnp
from jax.experimental import pallas as pl
from jax.experimental.pallas import tpu as pltpu


def _round_up(n, m):
    return ((n + m - 1) // m) * m


def _block_diag2(w):
    """[[W, 0], [0, W]] — lets two folded positions share one matmul without mixing."""
    z = jnp.zeros(w.shape, w.dtype)
    return jnp.concatenate(
        [jnp.concatenate([w, z], axis=1), jnp.concatenate([z, w], axis=1)], axis=0)


def _pwff_kernel(x_ref, w1_ref, b1_ref, w2_ref, b2_ref, o_ref, acc_ref):
    # x_ref:  (tm, hid_e)  native-dtype row tile      w1_ref: (hid_e, tpf) compute dtype
    # b1_ref: (1, tpf) f32                            w2_ref: (tpf, hid_e) compute dtype
    # b2_ref: (1, hid_e) f32                          acc_ref: (tm, hid_e) f32 scratch
    j = pl.program_id(1)

    @pl.when(j == 0)
    def _():
        acc_ref[...] = jnp.zeros_like(acc_ref)

    xt = x_ref[...].astype(w1_ref.dtype)              # per-tile cast (VPU, hidden by DMA)
    h = jnp.dot(xt, w1_ref[...], preferred_element_type=jnp.float32)
    h = jnp.maximum(h + b1_ref[...], 0.0)              # bias + ReLU on the f32 accumulator
    # TODO(synk): training-mode dropout would use pltpu.prng_seed / prng_random_bits;
    # eval-mode dropout is the identity, which matches the PyTorch reference here.
    acc_ref[...] += jnp.dot(h.astype(w2_ref.dtype), w2_ref[...],
                            preferred_element_type=jnp.float32)

    @pl.when(j == pl.num_programs(1) - 1)
    def _():
        o_ref[...] = (acc_ref[...] + b2_ref[...]).astype(o_ref.dtype)


@functools.partial(
    jax.jit,
    static_argnames=("tm", "tpf_max", "compute_dtype", "single_buffer_weights"))
def _pwff_impl(x, w1, b1, w2, b2, *, tm, tpf_max, compute_dtype,
               single_buffer_weights):
    B, L, hid = x.shape
    pf = w1.shape[1]
    M = B * L
    out_dtype = x.dtype            # keep module semantics (f32 in -> f32 out)

    # --- lane-dense folding: pack 2 adjacent positions into one 128-lane row ----------
    fold = 2 if (hid % 128 != 0 and (2 * hid) % 128 == 0) else 1
    x2d = x.reshape(M, hid)
    if fold == 2 and M % 2 != 0:
        # one padded row keeps the 128-lane (unmasked vst) path; sliced off below
        x2d = jnp.pad(x2d, ((0, 1), (0, 0)))
    M_flat = x2d.shape[0]
    hid_e, pf_e, M_e = fold * hid, fold * pf, M_flat // fold
    if fold == 2:
        w1_e, w2_e = _block_diag2(w1), _block_diag2(w2)
        b1_e, b2_e = jnp.tile(b1, 2), jnp.tile(b2, 2)
    else:
        w1_e, w2_e, b1_e, b2_e = w1, w2, b1, b2

    # x keeps its native dtype (cast happens per-tile in the kernel: no extra HBM pass).
    x2d = x2d.reshape(M_e, hid_e)
    w1_e = w1_e.astype(compute_dtype)
    w2_e = w2_e.astype(compute_dtype)
    b1_e = b1_e.reshape(1, pf_e).astype(jnp.float32)
    b2_e = b2_e.reshape(1, hid_e).astype(jnp.float32)

    # --- pf tiling: keep the (tm, pf) f32 intermediate inside VMEM at production dims --
    tpf = pf_e
    if pf_e > tpf_max:
        t = (tpf_max // 128) * 128
        while t >= 128:
            if pf_e % t == 0:
                tpf = t
                break
            t -= 128
    npf = pf_e // tpf
    # Single-buffer the weights only when they are truly constant across the grid.
    single_buf = bool(single_buffer_weights) and npf == 1

    # --- generation-aware VMEM budget (v7x 64 MiB, v5e/v6e 128 MiB) --------------------
    try:
        vmem_phys = int(pltpu.get_tpu_info().vmem_capacity_bytes)
        vmem_limit = max(32 << 20, vmem_phys - (8 << 20))   # headroom for Mosaic scratch
    except Exception:
        vmem_limit = 32 << 20

    xb = jnp.dtype(x.dtype).itemsize
    ob = jnp.dtype(out_dtype).itemsize
    cb = jnp.dtype(compute_dtype).itemsize
    nbuf_w = 1 if single_buf else 2

    def need(tm_):
        return (2 * tm_ * hid_e * xb              # x tiles (double buffered)
                + tm_ * hid_e * cb                # in-kernel compute-dtype copy of x tile
                + 2 * tm_ * hid_e * ob            # out tiles (double buffered)
                + tm_ * hid_e * 4                 # f32 accumulator scratch
                + nbuf_w * 2 * hid_e * tpf * cb   # W1 + W2 blocks
                + nbuf_w * 8 * (tpf + hid_e) * 4  # biases (sublane padded)
                + tm_ * tpf * (4 + cb)            # live h (f32) + compute-dtype copy
                + tm_ * hid_e * 4)                # second-dot partial before accumulate

    # --- row tile: as large as VMEM allows, but keep >=2 steps for v7x's two TCs -------
    tm_eff = min(_round_up(tm, 8), _round_up(M_e, 8))
    if M_e >= 128:
        tm_eff = min(tm_eff, _round_up(-(-M_e // 2), 8))
    budget = int(0.75 * vmem_limit)
    while tm_eff > 8 and need(tm_eff) > budget:
        tm_eff = max(8, _round_up(tm_eff // 2, 8))
    n_rows = pl.cdiv(M_e, tm_eff)          # ragged last block handled by Pallas masking

    cost = pl.CostEstimate(
        flops=int(4 * M_e * hid_e * pf_e),
        transcendentals=0,
        bytes_accessed=int(M_e * hid_e * (xb + ob)
                           + 2 * hid_e * pf_e * cb + 4 * (pf_e + hid_e)))

    wkw = dict(pipeline_mode=pl.Buffered(1)) if single_buf else {}
    grid_spec = pltpu.PrefetchScalarGridSpec(
        num_scalar_prefetch=0,
        grid=(n_rows, npf),
        in_specs=[
            pl.BlockSpec((tm_eff, hid_e), lambda i, j: (i, 0)),        # x row tile
            pl.BlockSpec((hid_e, tpf), lambda i, j: (0, j), **wkw),    # W1 column block
            pl.BlockSpec((1, tpf), lambda i, j: (0, j), **wkw),        # b1 block
            pl.BlockSpec((tpf, hid_e), lambda i, j: (j, 0), **wkw),    # W2 row block
            pl.BlockSpec((1, hid_e), lambda i, j: (0, 0), **wkw),      # b2
        ],
        out_specs=pl.BlockSpec((tm_eff, hid_e), lambda i, j: (i, 0)),
        scratch_shapes=[pltpu.VMEM((tm_eff, hid_e), jnp.float32)],
    )

    out2d = pl.pallas_call(
        _pwff_kernel,
        out_shape=jax.ShapeDtypeStruct((M_e, hid_e), out_dtype),
        grid_spec=grid_spec,
        compiler_params=pltpu.CompilerParams(
            dimension_semantics=("parallel", "arbitrary"),   # rows shard across v7x TCs
            vmem_limit_bytes=int(vmem_limit),
        ),
        cost_estimate=cost,
    )(x2d, w1_e, b1_e, w2_e, b2_e)

    return out2d.reshape(M_flat, hid)[:M].reshape(B, L, hid)


_SINGLE_BUF_WEIGHTS_OK = True   # flipped off if pl.Buffered(1) is unsupported here


def positionwise_feedforward(x, w1, b1, w2, b2, *, tm=2048, tpf_max=2048,
                             compute_dtype=jnp.bfloat16):
    """x: [B, L, hid] -> [B, L, hid].  w1: [hid, pf], b1: [pf], w2: [pf, hid], b2: [hid]."""
    global _SINGLE_BUF_WEIGHTS_OK
    kwargs = dict(tm=tm, tpf_max=tpf_max, compute_dtype=compute_dtype)
    if _SINGLE_BUF_WEIGHTS_OK:
        try:
            return _pwff_impl(x, w1, b1, w2, b2, single_buffer_weights=True, **kwargs)
        except Exception:
            # pipeline_mode=pl.Buffered(1) not supported by this jax/libtpu; fall back
            # to default double-buffered weights (correctness identical).
            _SINGLE_BUF_WEIGHTS_OK = False
    return _pwff_impl(x, w1, b1, w2, b2, single_buffer_weights=False, **kwargs)


def init_params(key, hid_dim, pf_dim, dtype=jnp.float32):
    """Deterministic synthetic parameters (shapes match nn.Conv1d(k=1), pre-transposed)."""
    k1, k2, k3, k4 = jax.random.split(key, 4)
    bound1 = 1.0 / (hid_dim ** 0.5)
    bound2 = 1.0 / (pf_dim ** 0.5)
    w1 = jax.random.uniform(k1, (hid_dim, pf_dim), dtype, -bound1, bound1)
    b1 = jax.random.uniform(k2, (pf_dim,), dtype, -bound1, bound1)
    w2 = jax.random.uniform(k3, (pf_dim, hid_dim), dtype, -bound2, bound2)
    b2 = jax.random.uniform(k4, (hid_dim,), dtype, -bound2, bound2)
    return w1, b1, w2, b2


if __name__ == "__main__":
    hid_dim, pf_dim = 64, 256
    key = jax.random.PRNGKey(0)
    kx, kp = jax.random.split(key)
    w1, b1, w2, b2 = init_params(kp, hid_dim, pf_dim)

    def ref_fn(xx):
        return jnp.maximum(xx @ w1 + b1, 0.0) @ w2 + b2

    # 1) Small shape, f32 compute path (tight numerical check).
    B, L = 2, 8
    x = jax.random.normal(kx, (B, L, hid_dim), jnp.float32)
    out_f32 = positionwise_feedforward(x, w1, b1, w2, b2, compute_dtype=jnp.float32)
    jax.block_until_ready(out_f32)
    assert out_f32.shape == (B, L, hid_dim)
    assert jnp.allclose(out_f32, ref_fn(x), atol=1e-4, rtol=1e-4)

    # 2) Default bf16 compute + ragged B*L (ragged last row block), looser tolerance.
    B2, L2 = 3, 10
    x2 = jax.random.normal(jax.random.fold_in(kx, 1), (B2, L2, hid_dim), jnp.float32)
    out_bf16 = positionwise_feedforward(x2, w1, b1, w2, b2)
    jax.block_until_ready(out_bf16)
    assert out_bf16.shape == (B2, L2, hid_dim)
    assert jnp.allclose(out_bf16, ref_fn(x2), atol=3e-2, rtol=3e-2)

    # 3) Odd B*L (exercises the 1-row fold pad) + pf tiling (npf=4) in f32.
    B3, L3 = 3, 7
    x3 = jax.random.normal(jax.random.fold_in(kx, 2), (B3, L3, hid_dim), jnp.float32)
    out_pf = positionwise_feedforward(x3, w1, b1, w2, b2, tpf_max=128,
                                      compute_dtype=jnp.float32)
    jax.block_until_ready(out_pf)
    assert out_pf.shape == (B3, L3, hid_dim)
    assert jnp.allclose(out_pf, ref_fn(x3), atol=1e-4, rtol=1e-4)

    print("KERNEL_OK")
</pallas_src>

<mosaic_0001>
module attributes {stable_mosaic.version = 11 : i64} {
  func.func @_pwff_kernel(%arg0: i32, %arg1: i32, %arg2: memref<8x128xf32, #tpu.memory_space<vmem>>, %arg3: memref<128x512xf32, #tpu.memory_space<vmem>>, %arg4: memref<1x512xf32, #tpu.memory_space<vmem>>, %arg5: memref<512x128xf32, #tpu.memory_space<vmem>>, %arg6: memref<1x128xf32, #tpu.memory_space<vmem>>, %arg7: memref<8x128xf32, #tpu.memory_space<vmem>>, %arg8: memref<8x128xf32, #tpu.memory_space<vmem>>) attributes {dimension_semantics = [#tpu.dimension_semantics<parallel>, #tpu.dimension_semantics<arbitrary>], iteration_bounds = array<i64: 1, 1>, scalar_prefetch = 0 : i64, scratch_operands = 1 : i64, tpu.core_type = #tpu.core_type<tc>, window_params = [{transform_indices = @transform_0, window_bounds = array<i64: 8, 128>}, {pipeline_mode = #tpu.pipeline_mode<synchronous>, transform_indices = @transform_1, window_bounds = array<i64: 128, 512>}, {pipeline_mode = #tpu.pipeline_mode<synchronous>, transform_indices = @transform_2, window_bounds = array<i64: 1, 512>}, {pipeline_mode = #tpu.pipeline_mode<synchronous>, transform_indices = @transform_3, window_bounds = array<i64: 512, 128>}, {pipeline_mode = #tpu.pipeline_mode<synchronous>, transform_indices = @transform_4, window_bounds = array<i64: 1, 128>}, {transform_indices = @transform_5, window_bounds = array<i64: 8, 128>}]} {
    %c0_i32 = arith.constant 0 : i32
    %0 = arith.cmpi eq, %arg1, %c0_i32 : i32
    %1 = arith.extui %0 : i1 to i32
    %c0_i32_0 = arith.constant 0 : i32
    %2 = arith.cmpi ne, %1, %c0_i32_0 : i32
    scf.if %2 {
      %cst_16 = arith.constant 0.000000e+00 : f32
      %19 = vector.broadcast %cst_16 : f32 to vector<8x128xf32>
      %c0_17 = arith.constant 0 : index
      %c0_18 = arith.constant 0 : index
      %20 = vector.load %arg8[%c0_17, %c0_18] : memref<8x128xf32, #tpu.memory_space<vmem>>, vector<8x128xf32>
      tpu.vector_store %arg8[%c0_17, %c0_18], %19 {strides = array<i32>} : memref<8x128xf32, #tpu.memory_space<vmem>>, vector<8x128xf32>,
    } else {
    }
    %c0 = arith.constant 0 : index
    %c0_1 = arith.constant 0 : index
    %3 = vector.load %arg2[%c0, %c0_1] : memref<8x128xf32, #tpu.memory_space<vmem>>, vector<8x128xf32>
    %c0_2 = arith.constant 0 : index
    %c0_3 = arith.constant 0 : index
    %4 = vector.load %arg3[%c0_2, %c0_3] : memref<128x512xf32, #tpu.memory_space<vmem>>, vector<128x512xf32>
    %cst = arith.constant dense<0.000000e+00> : vector<8x512xf32>
    %5 = tpu.matmul %3, %4, %cst {dimension_numbers = #tpu.dot_dimension_numbers<[1], [0], [0], [1], [0, 0, 1, 1], [], []>} : vector<8x128xf32>, vector<128x512xf32>, vector<8x512xf32> -> vector<8x512xf32>
    %c0_4 = arith.constant 0 : index
    %c0_5 = arith.constant 0 : index
    %6 = vector.load %arg4[%c0_4, %c0_5] : memref<1x512xf32, #tpu.memory_space<vmem>>, vector<1x512xf32>
    %7 = vector.broadcast %6 : vector<1x512xf32> to vector<8x512xf32>
    %8 = arith.addf %5, %7 : vector<8x512xf32>
    %cst_6 = arith.constant 0.000000e+00 : f32
    %9 = vector.broadcast %cst_6 : f32 to vector<8x512xf32>
    %10 = arith.maximumf %8, %9 : vector<8x512xf32>
    %c0_7 = arith.constant 0 : index
    %c0_8 = arith.constant 0 : index
    %11 = vector.load %arg8[%c0_7, %c0_8] : memref<8x128xf32, #tpu.memory_space<vmem>>, vector<8x128xf32>
    %c0_9 = arith.constant 0 : index
    %c0_10 = arith.constant 0 : index
    %12 = vector.load %arg5[%c0_9, %c0_10] : memref<512x128xf32, #tpu.memory_space<vmem>>, vector<512x128xf32>
    %cst_11 = arith.constant dense<0.000000e+00> : vector<8x128xf32>
    %13 = tpu.matmul %10, %12, %cst_11 {dimension_numbers = #tpu.dot_dimension_numbers<[1], [0], [0], [1], [0, 0, 1, 1], [], []>} : vector<8x512xf32>, vector<512x128xf32>, vector<8x128xf32> -> vector<8x128xf32>
    %14 = arith.addf %11, %13 : vector<8x128xf32>
    %c0_12 = arith.constant 0 : index
    %c0_13 = arith.constant 0 : index
    %15 = vector.load %arg8[%c0_12, %c0_13] : memref<8x128xf32, #tpu.memory_space<vmem>>, vector<8x128xf32>
    tpu.vector_store %arg8[%c0_12, %c0_13], %14 {strides = array<i32>} : memref<8x128xf32, #tpu.memory_space<vmem>>, vector<8x128xf32>,
    %c0_i32_14 = arith.constant 0 : i32
    %16 = arith.cmpi eq, %arg1, %c0_i32_14 : i32
    %17 = arith.extui %16 : i1 to i32
    %c0_i32_15 = arith.constant 0 : i32
    %18 = arith.cmpi ne, %17, %c0_i32_15 : i32
    scf.if %18 {
      %c0_16 = arith.constant 0 : index
      %c0_17 = arith.constant 0 : index
      %19 = vector.load %arg8[%c0_16, %c0_17] : memref<8x128xf32, #tpu.memory_space<vmem>>, vector<8x128xf32>
      %c0_18 = arith.constant 0 : index
      %c0_19 = arith.constant 0 : index
      %20 = vector.load %arg6[%c0_18, %c0_19] : memref<1x128xf32, #tpu.memory_space<vmem>>, vector<1x128xf32>
      %21 = vector.broadcast %20 : vector<1x128xf32> to vector<8x128xf32>
      %22 = arith.addf %19, %21 : vector<8x128xf32>
      %c0_20 = arith.constant 0 : index
      %c0_21 = arith.constant 0 : index
      %23 = vector.load %arg7[%c0_20, %c0_21] : memref<8x128xf32, #tpu.memory_space<vmem>>, vector<8x128xf32>
      tpu.vector_store %arg7[%c0_20, %c0_21], %22 {strides = array<i32>} : memref<8x128xf32, #tpu.memory_space<vmem>>, vector<8x128xf32>,
    } else {
    }
    return
  }
  func.func @transform_0(%arg0: i32, %arg1: i32) -> (i32, i32) {
    %c0_i32 = arith.constant 0 : i32
    %c0_i32_0 = arith.constant 0 : i32
    return %arg0, %c0_i32 : i32, i32
  }
  func.func @transform_1(%arg0: i32, %arg1: i32) -> (i32, i32) {
    %c0_i32 = arith.constant 0 : i32
    %c0_i32_0 = arith.constant 0 : i32
    return %c0_i32, %arg1 : i32, i32
  }
  func.func @transform_2(%arg0: i32, %arg1: i32) -> (i32, i32) {
    %c0_i32 = arith.constant 0 : i32
    %c0_i32_0 = arith.constant 0 : i32
    return %c0_i32, %arg1 : i32, i32
  }
  func.func @transform_3(%arg0: i32, %arg1: i32) -> (i32, i32) {
    %c0_i32 = arith.constant 0 : i32
    %c0_i32_0 = arith.constant 0 : i32
    return %arg1, %c0_i32 : i32, i32
  }
  func.func @transform_4(%arg0: i32, %arg1: i32) -> (i32, i32) {
    %c0_i32 = arith.constant 0 : i32
    %c0_i32_0 = arith.constant 0 : i32
    %c0_i32_1 = arith.constant 0 : i32
    return %c0_i32, %c0_i32_0 : i32, i32
  }
  func.func @transform_5(%arg0: i32, %arg1: i32) -> (i32, i32) {
    %c0_i32 = arith.constant 0 : i32
    %c0_i32_0 = arith.constant 0 : i32
    return %arg0, %c0_i32 : i32, i32
  }
}

module attributes {stable_mosaic.version = 11 : i64} {
  func.func @_pwff_kernel(%arg0: i32, %arg1: i32, %arg2: memref<8x128xf32, #tpu.memory_space<vmem>>, %arg3: memref<128x512xf32, #tpu.memory_space<vmem>>, %arg4: memref<1x512xf32, #tpu.memory_space<vmem>>, %arg5: memref<512x128xf32, #tpu.memory_space<vmem>>, %arg6: memref<1x128xf32, #tpu.memory_space<vmem>>, %arg7: memref<8x128xf32, #tpu.memory_space<vmem>>, %arg8: memref<8x128xf32, #tpu.memory_space<vmem>>) attributes {dimension_semantics = [#tpu.dimension_semantics<parallel>, #tpu.dimension_semantics<arbitrary>], iteration_bounds = array<i64: 1, 1>, scalar_prefetch = 0 : i64, scratch_operands = 1 : i64, tpu.core_type = #tpu.core_type<tc>, window_params = [{transform_indices = @transform_0, window_bounds = array<i64: 8, 128>}, {transform_indices = @transform_1, window_bounds = array<i64: 128, 512>}, {transform_indices = @transform_2, window_bounds = array<i64: 1, 512>}, {transform_indices = @transform_3, window_bounds = array<i64: 512, 128>}, {pipeline_mode = #tpu.pipeline_mode<synchronous>, transform_indices = @transform_4, window_bounds = array<i64: 1, 128>}, {transform_indices = @transform_5, window_bounds = array<i64: 8, 128>}]} {
    %c0_i32 = arith.constant 0 : i32
    %0 = arith.cmpi eq, %arg1, %c0_i32 : i32
    %1 = arith.extui %0 : i1 to i32
    %c0_i32_0 = arith.constant 0 : i32
    %2 = arith.cmpi ne, %1, %c0_i32_0 : i32
    scf.if %2 {
      %cst_16 = arith.constant 0.000000e+00 : f32
      %19 = vector.broadcast %cst_16 : f32 to vector<8x128xf32>
      %c0_17 = arith.constant 0 : index
      %c0_18 = arith.constant 0 : index
      %20 = vector.load %arg8[%c0_17, %c0_18] : memref<8x128xf32, #tpu.memory_space<vmem>>, vector<8x128xf32>
      tpu.vector_store %arg8[%c0_17, %c0_18], %19 {strides = array<i32>} : memref<8x128xf32, #tpu.memory_space<vmem>>, vector<8x128xf32>,
    } else {
    }
    %c0 = arith.constant 0 : index
    %c0_1 = arith.constant 0 : index
    %3 = vector.load %arg2[%c0, %c0_1] : memref<8x128xf32, #tpu.memory_space<vmem>>, vector<8x128xf32>
    %c0_2 = arith.constant 0 : index
    %c0_3 = arith.constant 0 : index
    %4 = vector.load %arg3[%c0_2, %c0_3] : memref<128x512xf32, #tpu.memory_space<vmem>>, vector<128x512xf32>
    %cst = arith.constant dense<0.000000e+00> : vector<8x512xf32>
    %5 = tpu.matmul %3, %4, %cst {dimension_numbers = #tpu.dot_dimension_numbers<[1], [0], [0], [1], [0, 0, 1, 1], [], []>} : vector<8x128xf32>, vector<128x512xf32>, vector<8x512xf32> -> vector<8x512xf32>
    %c0_4 = arith.constant 0 : index
    %c0_5 = arith.constant 0 : index
    %6 = vector.load %arg4[%c0_4, %c0_5] : memref<1x512xf32, #tpu.memory_space<vmem>>, vector<1x512xf32>
    %7 = vector.broadcast %6 : vector<1x512xf32> to vector<8x512xf32>
    %8 = arith.addf %5, %7 : vector<8x512xf32>
    %cst_6 = arith.constant 0.000000e+00 : f32
    %9 = vector.broadcast %cst_6 : f32 to vector<8x512xf32>
    %10 = arith.maximumf %8, %9 : vector<8x512xf32>
    %c0_7 = arith.constant 0 : index
    %c0_8 = arith.constant 0 : index
    %11 = vector.load %arg8[%c0_7, %c0_8] : memref<8x128xf32, #tpu.memory_space<vmem>>, vector<8x128xf32>
    %c0_9 = arith.constant 0 : index
    %c0_10 = arith.constant 0 : index
    %12 = vector.load %arg5[%c0_9, %c0_10] : memref<512x128xf32, #tpu.memory_space<vmem>>, vector<512x128xf32>
    %cst_11 = arith.constant dense<0.000000e+00> : vector<8x128xf32>
    %13 = tpu.matmul %10, %12, %cst_11 {dimension_numbers = #tpu.dot_dimension_numbers<[1], [0], [0], [1], [0, 0, 1, 1], [], []>} : vector<8x512xf32>, vector<512x128xf32>, vector<8x128xf32> -> vector<8x128xf32>
    %14 = arith.addf %11, %13 : vector<8x128xf32>
    %c0_12 = arith.constant 0 : index
    %c0_13 = arith.constant 0 : index
    %15 = vector.load %arg8[%c0_12, %c0_13] : memref<8x128xf32, #tpu.memory_space<vmem>>, vector<8x128xf32>
    tpu.vector_store %arg8[%c0_12, %c0_13], %14 {strides = array<i32>} : memref<8x128xf32, #tpu.memory_space<vmem>>, vector<8x128xf32>,
    %c0_i32_14 = arith.constant 0 : i32
    %16 = arith.cmpi eq, %arg1, %c0_i32_14 : i32
    %17 = arith.extui %16 : i1 to i32
    %c0_i32_15 = arith.constant 0 : i32
    %18 = arith.cmpi ne, %17, %c0_i32_15 : i32
    scf.if %18 {
      %c0_16 = arith.constant 0 : index
      %c0_17 = arith.constant 0 : index
      %19 = vector.load %arg8[%c0_16, %c0_17] : memref<8x128xf32, #tpu.memory_space<vmem>>, vector<8x128xf32>
      %c0_18 = arith.constant 0 : index
      %c0_19 = arith.constant 0 : index
      %20 = vector.load %arg6[%c0_18, %c0_19] : memref<1x128xf32, #tpu.memory_space<vmem>>, vector<1x128xf32>
      %21 = vector.broadcast %20 : vector<1x128xf32> to vector<8x128xf32>
      %22 = arith.addf %19, %21 : vector<8x128xf32>
      %c0_20 = arith.constant 0 : index
      %c0_21 = arith.constant 0 : index
      %23 = vector.load %arg7[%c0_20, %c0_21] : memref<8x128xf32, #tpu.memory_space<vmem>>, vector<8x128xf32>
      tpu.vector_store %arg7[%c0_20, %c0_21], %22 {strides = array<i32>} : memref<8x128xf32, #tpu.memory_space<vmem>>, vector<8x128xf32>,
    } else {
    }
    return
  }
  func.func @transform_0(%arg0: i32, %arg1: i32) -> (i32, i32) {
    %c0_i32 = arith.constant 0 : i32
    %c0_i32_0 = arith.constant 0 : i32
    return %arg0, %c0_i32 : i32, i32
  }
  func.func @transform_1(%arg0: i32, %arg1: i32) -> (i32, i32) {
    %c0_i32 = arith.constant 0 : i32
    %c0_i32_0 = arith.constant 0 : i32
    return %c0_i32, %arg1 : i32, i32
  }
  func.func @transform_2(%arg0: i32, %arg1: i32) -> (i32, i32) {
    %c0_i32 = arith.constant 0 : i32
    %c0_i32_0 = arith.constant 0 : i32
    return %c0_i32, %arg1 : i32, i32
  }
  func.func @transform_3(%arg0: i32, %arg1: i32) -> (i32, i32) {
    %c0_i32 = arith.constant 0 : i32
    %c0_i32_0 = arith.constant 0 : i32
    return %arg1, %c0_i32 : i32, i32
  }
  func.func @transform_4(%arg0: i32, %arg1: i32) -> (i32, i32) {
    %c0_i32 = arith.constant 0 : i32
    %c0_i32_0 = arith.constant 0 : i32
    %c0_i32_1 = arith.constant 0 : i32
    return %c0_i32, %c0_i32_0 : i32, i32
  }
  func.func @transform_5(%arg0: i32, %arg1: i32) -> (i32, i32) {
    %c0_i32 = arith.constant 0 : i32
    %c0_i32_0 = arith.constant 0 : i32
    return %arg0, %c0_i32 : i32, i32
  }
}

</mosaic_0001>

<bundles_post_ra>
// kernel: tile.19
= control target key start
LH: loop header
LB: loop body
LE: loop exit
PB: predicated region body
PF: predicated region fallthrough
CT: control target
= control target key end

     0   :  { %vm7_vm0 = vcmask 523264   ;;  %vm13_vm1 = vcmask 1048064   ;;  %s39_s0 = inlined_call_operand.vmem [shape: f32[2,64], index: 0, kind: input, shape index: {}]   ;;  %s40_s1 = inlined_call_operand.vmem [shape: f32[1,128], index: 1, kind: output, shape index: {}]  }
   0x1   :  { %v4_v0 = vld [vmem:[%s39_s0] sm:$0x3]  ;;  %s22_s0 = smov 64  }
   0x2   :  { %5 = vst [vmem:[#allocation1] sm:$0x3] %v4_v0 }
   0x9   :  { %v10_v1 = vld [vmem:[#allocation1 + $0x1] sm:$0x1]   ;;  %v6_v2 = vld [vmem:[#allocation1] sm:$0x1]  }
   0xa   :  { %11 = vrot.lane.b32.xlu0 %v10_v1, %s22_s0  ;;  %8 = vst.msk [vmem:[#allocation0] sm:$0x1] %vm7_vm0, %v6_v2  }
  0x7c   :  { %v12_v3 = vpop.permute.xlu0 %11  }
  0x7d   :  { %14 = vst.msk [vmem:[#allocation0] sm:$0x1] %vm13_vm1, %v12_v3  }
  0x84   :  { %v17_v4 = vld [vmem:[#allocation0] sm:$0x1] }
  0x85   :  { %20 = vst [vmem:[%s40_s1] sm:$0x1] %v17_v4 }

// kernel: tile.17
= control target key start
LH: loop header
LB: loop body
LE: loop exit
PB: predicated region body
PF: predicated region fallthrough
CT: control target
= control target key end

     0   :  { %s22_s0 = inlined_call_operand.vmem [shape: f32[64], index: 0, kind: input, shape index: {}]   ;;  %s23_s1 = inlined_call_operand.vmem [shape: f32[2,64], index: 1, kind: output, shape index: {}]  }
   0x1   :  { %v4_v0 = vld [vmem:[%s22_s0] ss:$0 sm:$0xff] }
   0x2   :  { %5 = vst [vmem:[%s23_s1] sm:$0x3] %v4_v0 }

// kernel: _pwff_impl.1
= control target key start
LH: loop header
LB: loop body
LE: loop exit
PB: predicated region body
PF: predicated region fallthrough
CT: control target
= control target key end

     0   :  { %s772_s1 = inlined_call_operand.vmem [shape: f32[128,512], index: 1, kind: input, shape index: {}]   ;;  %s773_s0 = inlined_call_operand.vmem [shape: f32[8,128], index: 0, kind: input, shape index: {}]   ;;  %s774_s3 = inlined_call_operand.vmem [shape: f32[512,128], index: 3, kind: input, shape index: {}]   ;;  %s775_s2 = inlined_call_operand.vmem [shape: f32[1,512], index: 2, kind: input, shape index: {}]   ;;  %s776_s4 = inlined_call_operand.vmem [shape: f32[1,128], index: 4, kind: input, shape index: {}]   ;;  %s777_s5 = inlined_call_operand.vmem [shape: f32[8,128], index: 5, kind: output, shape index: {}]  }
   0x1   :  { %v88_v0 = vld [vmem:[%s772_s1 + $0x1f0] sm:$0xff]  ;;  %v89_v2 = vld [vmem:[%s772_s1 + $0x1f8] sm:$0xff]  ;;  %v86_v7 = vld [vmem:[%s772_s1 + $0x1e0] sm:$0xff] }
   0x2   :  { %v84_v1 = vld [vmem:[%s772_s1 + $0x1d0] sm:$0xff]  ;;  %140 = vmatpush.msra.mxu2 %v88_v0  ;;  %160 = vmatpush.msra.mxu3 %v89_v2  ;;  %v85_v3 = vld [vmem:[%s772_s1 + $0x1d8] sm:$0xff]  ;;  %v87_v8 = vld [vmem:[%s772_s1 + $0x1e8] sm:$0xff] }
   0x3   :  { %v80_v4 = vld [vmem:[%s772_s1 + $0x1b0] sm:$0xff]  ;;  %v81_v5 = vld [vmem:[%s772_s1 + $0x1b8] sm:$0xff]  ;;  %100 = vmatpush.msra.mxu0 %v86_v7  ;;  %120 = vmatpush.msra.mxu1 %v87_v8  ;;  %v82_v10 = vld [vmem:[%s772_s1 + $0x1c0] sm:$0xff] }
   0x4   :  { %141 = vmatpush.msra.mxu2 %v84_v1  ;;  %161 = vmatpush.msra.mxu3 %v85_v3  ;;  %v76_v6 = vld [vmem:[%s772_s1 + $0x190] sm:$0xff]  ;;  %v77_v9 = vld [vmem:[%s772_s1 + $0x198] sm:$0xff]  ;;  %v83_v11 = vld [vmem:[%s772_s1 + $0x1c8] sm:$0xff] }
   0x5   :  { %v78_v12 = vld [vmem:[%s772_s1 + $0x1a0] sm:$0xff]  ;;  %v72_v13 = vld [vmem:[%s772_s1 + $0x170] sm:$0xff]  ;;  %v73_v14 = vld [vmem:[%s772_s1 + $0x178] sm:$0xff]  ;;  %101 = vmatpush.msra.mxu0 %v82_v10  ;;  %121 = vmatpush.msra.mxu1 %v83_v11 }
   0x6   :  { %142 = vmatpush.msra.mxu2 %v80_v4  ;;  %162 = vmatpush.msra.mxu3 %v81_v5  ;;  %v79_v15 = vld [vmem:[%s772_s1 + $0x1a8] sm:$0xff]  ;;  %v74_v16 = vld [vmem:[%s772_s1 + $0x180] sm:$0xff]  ;;  %v68_v18 = vld [vmem:[%s772_s1 + $0x150] sm:$0xff] }
   0x7   :  { %v75_v17 = vld [vmem:[%s772_s1 + $0x188] sm:$0xff]  ;;  %v69_v19 = vld [vmem:[%s772_s1 + $0x158] sm:$0xff]  ;;  %102 = vmatpush.msra.mxu0 %v78_v12  ;;  %122 = vmatpush.msra.mxu1 %v79_v15  ;;  %v70_v20 = vld [vmem:[%s772_s1 + $0x160] sm:$0xff] }
   0x8   :  { %143 = vmatpush.msra.mxu2 %v76_v6  ;;  %163 = vmatpush.msra.mxu3 %v77_v9  ;;  %v71_v21 = vld [vmem:[%s772_s1 + $0x168] sm:$0xff]  ;;  %v64_v22 = vld [vmem:[%s772_s1 + $0x130] sm:$0xff]  ;;  %v65_v23 = vld [vmem:[%s772_s1 + $0x138] sm:$0xff] }
   0x9   :  { %103 = vmatpush.msra.mxu0 %v74_v16  ;;  %123 = vmatpush.msra.mxu1 %v75_v17  ;;  %v66_v24 = vld [vmem:[%s772_s1 + $0x140] sm:$0xff]  ;;  %v67_v25 = vld [vmem:[%s772_s1 + $0x148] sm:$0xff]  ;;  %v60_v26 = vld [vmem:[%s772_s1 + $0x110] sm:$0xff] }
   0xa   :  { %144 = vmatpush.msra.mxu2 %v72_v13  ;;  %164 = vmatpush.msra.mxu3 %v73_v14  ;;  %v61_v27 = vld [vmem:[%s772_s1 + $0x118] sm:$0xff]  ;;  %v62_v28 = vld [vmem:[%s772_s1 + $0x120] sm:$0xff]  ;;  %v63_v29 = vld [vmem:[%s772_s1 + $0x128] sm:$0xff] }
   0xb   :  { %104 = vmatpush.msra.mxu0 %v70_v20  ;;  %124 = vmatpush.msra.mxu1 %v71_v21  ;;  %v56_v30 = vld [vmem:[%s772_s1 + $0xf0] sm:$0xff]  ;;  %v57_v31 = vld [vmem:[%s772_s1 + $0xf8] sm:$0xff]  ;;  %v58_v32 = vld [vmem:[%s772_s1 + $0x100] sm:$0xff] }
   0xc   :  { %145 = vmatpush.msra.mxu2 %v68_v18  ;;  %165 = vmatpush.msra.mxu3 %v69_v19  ;;  %v59_v33 = vld [vmem:[%s772_s1 + $0x108] sm:$0xff]  ;;  %v52_v34 = vld [vmem:[%s772_s1 + $0xd0] sm:$0xff]  ;;  %v53_v35 = vld [vmem:[%s772_s1 + $0xd8] sm:$0xff] }
   0xd   :  { %105 = vmatpush.msra.mxu0 %v66_v24  ;;  %125 = vmatpush.msra.mxu1 %v67_v25  ;;  %v54_v36 = vld [vmem:[%s772_s1 + $0xe0] sm:$0xff]  ;;  %v55_v37 = vld [vmem:[%s772_s1 + $0xe8] sm:$0xff]  ;;  %v48_v38 = vld [vmem:[%s772_s1 + $0xb0] sm:$0xff] }
   0xe   :  { %146 = vmatpush.msra.mxu2 %v64_v22  ;;  %166 = vmatpush.msra.mxu3 %v65_v23  ;;  %v49_v39 = vld [vmem:[%s772_s1 + $0xb8] sm:$0xff]  ;;  %v50_v40 = vld [vmem:[%s772_s1 + $0xc0] sm:$0xff]  ;;  %v51_v41 = vld [vmem:[%s772_s1 + $0xc8] sm:$0xff] }
   0xf   :  { %106 = vmatpush.msra.mxu0 %v62_v28  ;;  %126 = vmatpush.msra.mxu1 %v63_v29  ;;  %v44_v42 = vld [vmem:[%s772_s1 + $0x90] sm:$0xff]  ;;  %v45_v43 = vld [vmem:[%s772_s1 + $0x98] sm:$0xff]  ;;  %v46_v44 = vld [vmem:[%s772_s1 + $0xa0] sm:$0xff] }
  0x10   :  { %147 = vmatpush.msra.mxu2 %v60_v26  ;;  %167 = vmatpush.msra.mxu3 %v61_v27  ;;  %v47_v45 = vld [vmem:[%s772_s1 + $0xa8] sm:$0xff]  ;;  %v40_v46 = vld [vmem:[%s772_s1 + $0x70] sm:$0xff]  ;;  %v41_v47 = vld [vmem:[%s772_s1 + $0x78] sm:$0xff] }
  0x11   :  { %107 = vmatpush.msra.mxu0 %v58_v32  ;;  %127 = vmatpush.msra.mxu1 %v59_v33  ;;  %v42_v48 = vld [vmem:[%s772_s1 + $0x80] sm:$0xff]  ;;  %v43_v49 = vld [vmem:[%s772_s1 + $0x88] sm:$0xff]  ;;  %v36_v50 = vld [vmem:[%s772_s1 + $0x50] sm:$0xff] }
  0x12   :  { %148 = vmatpush.msra.mxu2 %v56_v30  ;;  %168 = vmatpush.msra.mxu3 %v57_v31  ;;  %v37_v51 = vld [vmem:[%s772_s1 + $0x58] sm:$0xff]  ;;  %v38_v52 = vld [vmem:[%s772_s1 + $0x60] sm:$0xff]  ;;  %v39_v53 = vld [vmem:[%s772_s1 + $0x68] sm:$0xff] }
  0x13   :  { %108 = vmatpush.msra.mxu0 %v54_v36  ;;  %128 = vmatpush.msra.mxu1 %v55_v37  ;;  %v32_v54 = vld [vmem:[%s772_s1 + $0x30] sm:$0xff]  ;;  %v33_v55 = vld [vmem:[%s772_s1 + $0x38] sm:$0xff]  ;;  %v34_v56 = vld [vmem:[%s772_s1 + $0x40] sm:$0xff] }
  0x14   :  { %149 = vmatpush.msra.mxu2 %v52_v34  ;;  %169 = vmatpush.msra.mxu3 %v53_v35  ;;  %v35_v57 = vld [vmem:[%s772_s1 + $0x48] sm:$0xff]  ;;  %v28_v58 = vld [vmem:[%s772_s1 + $0x10] sm:$0xff]  ;;  %v29_v59 = vld [vmem:[%s772_s1 + $0x18] sm:$0xff] }
  0x15   :  { %109 = vmatpush.msra.mxu0 %v50_v40  ;;  %129 = vmatpush.msra.mxu1 %v51_v41  ;;  %v25_v60 = vld [vmem:[%s773_s0] sm:$0xff]  ;;  %v31_v62 = vld [vmem:[%s772_s1 + $0x28] sm:$0xff]  ;;  %v232_v63 = vld [vmem:[%s774_s3 + $0x178] sm:$0xff] }
  0x16   :  { %150 = vmatpush.msra.mxu2 %v48_v38  ;;  %170 = vmatpush.msra.mxu3 %v49_v39  ;;  %v30_v61 = vld [vmem:[%s772_s1 + $0x20] sm:$0xff]  ;;  %v248_v0 = vld [vmem:[%s774_s3 + $0x1f8] sm:$0xff]  ;;  %v27_v2 = vld [vmem:[%s772_s1 + $0x8] sm:$0xff] }
  0x17   :  { %110 = vmatpush.msra.mxu0 %v46_v44  ;;  %130 = vmatpush.msra.mxu1 %v47_v45  ;;  %v26_v1 = vld [vmem:[%s772_s1] sm:$0xff]  ;;  %v231_v3 = vld [vmem:[%s774_s3 + $0x170] sm:$0xff]  ;;  %v200_v4 = vld [vmem:[%s774_s3 + $0x78] sm:$0xff] }
  0x18   :  { %151 = vmatpush.msra.mxu2 %v44_v42  ;;  %171 = vmatpush.msra.mxu3 %v45_v43  ;;  %v216_v5 = vld [vmem:[%s774_s3 + $0xf8] sm:$0xff]  ;;  %v247_v6 = vld [vmem:[%s774_s3 + $0x1f0] sm:$0xff]  ;;  %v230_v7 = vld [vmem:[%s774_s3 + $0x168] sm:$0xff] }
  0x19   :  { %111 = vmatpush.msra.mxu0 %v42_v48  ;;  %131 = vmatpush.msra.mxu1 %v43_v49  ;;  %v199_v8 = vld [vmem:[%s774_s3 + $0x70] sm:$0xff]  ;;  %v246_v10 = vld [vmem:[%s774_s3 + $0x1e8] sm:$0xff]  ;;  %v229_v11 = vld [vmem:[%s774_s3 + $0x160] sm:$0xff] }
  0x1a   :  { %152 = vmatpush.msra.mxu2 %v40_v46  ;;  %172 = vmatpush.msra.mxu3 %v41_v47  ;;  %v215_v9 = vld [vmem:[%s774_s3 + $0xf0] sm:$0xff]  ;;  %v198_v12 = vld [vmem:[%s774_s3 + $0x68] sm:$0xff]  ;;  %v245_v14 = vld [vmem:[%s774_s3 + $0x1e0] sm:$0xff] }
  0x1b   :  { %112 = vmatpush.msra.mxu0 %v38_v52  ;;  %132 = vmatpush.msra.mxu1 %v39_v53  ;;  %v214_v13 = vld [vmem:[%s774_s3 + $0xe8] sm:$0xff]  ;;  %v228_v15 = vld [vmem:[%s774_s3 + $0x158] sm:$0xff]  ;;  %v197_v16 = vld [vmem:[%s774_s3 + $0x60] sm:$0xff] }
  0x1c   :  { %153 = vmatpush.msra.mxu2 %v36_v50  ;;  %173 = vmatpush.msra.mxu3 %v37_v51  ;;  %v213_v17 = vld [vmem:[%s774_s3 + $0xe0] sm:$0xff]  ;;  %v244_v18 = vld [vmem:[%s774_s3 + $0x1d8] sm:$0xff]  ;;  %v227_v19 = vld [vmem:[%s774_s3 + $0x150] sm:$0xff] }
  0x1d   :  { %113 = vmatpush.msra.mxu0 %v34_v56  ;;  %133 = vmatpush.msra.mxu1 %v35_v57  ;;  %v196_v20 = vld [vmem:[%s774_s3 + $0x58] sm:$0xff]  ;;  %v243_v22 = vld [vmem:[%s774_s3 + $0x1d0] sm:$0xff]  ;;  %v226_v23 = vld [vmem:[%s774_s3 + $0x148] sm:$0xff] }
  0x1e   :  { %154 = vmatpush.msra.mxu2 %v32_v54  ;;  %174 = vmatpush.msra.mxu3 %v33_v55  ;;  %v212_v21 = vld [vmem:[%s774_s3 + $0xd8] sm:$0xff]  ;;  %v195_v24 = vld [vmem:[%s774_s3 + $0x50] sm:$0xff]  ;;  %v242_v26 = vld [vmem:[%s774_s3 + $0x1c8] sm:$0xff] }
  0x1f   :  { %114 = vmatpush.msra.mxu0 %v30_v61  ;;  %134 = vmatpush.msra.mxu1 %v31_v62  ;;  %v211_v25 = vld [vmem:[%s774_s3 + $0xd0] sm:$0xff]  ;;  %v225_v27 = vld [vmem:[%s774_s3 + $0x140] sm:$0xff]  ;;  %v194_v28 = vld [vmem:[%s774_s3 + $0x48] sm:$0xff] }
  0x20   :  { %155 = vmatpush.msra.mxu2 %v28_v58  ;;  %175 = vmatpush.msra.mxu3 %v29_v59  ;;  %v210_v29 = vld [vmem:[%s774_s3 + $0xc8] sm:$0xff]  ;;  %v241_v30 = vld [vmem:[%s774_s3 + $0x1c0] sm:$0xff]  ;;  %v224_v31 = vld [vmem:[%s774_s3 + $0x138] sm:$0xff] }
  0x21   :  { %156 = vmatmul.f32.vlgmr.msra.gmra.mxu2 %v25_v60  ;;  %176 = vmatmul.f32.vlgmr.msra.gmra.mxu3 %v25_v60  ;;  %v193_v32 = vld [vmem:[%s774_s3 + $0x40] sm:$0xff]  ;;  %v240_v34 = vld [vmem:[%s774_s3 + $0x1b8] sm:$0xff]  ;;  %v223_v35 = vld [vmem:[%s774_s3 + $0x130] sm:$0xff] }
  0x22   :  { %289 = vmatpush.msrb.mxu2 %v232_v63  ;;  %309 = vmatpush.msrb.mxu3 %v248_v0  ;;  %v209_v33 = vld [vmem:[%s774_s3 + $0xc0] sm:$0xff]  ;;  %v192_v36 = vld [vmem:[%s774_s3 + $0x38] sm:$0xff]  ;;  %v239_v38 = vld [vmem:[%s774_s3 + $0x1b0] sm:$0xff] }
  0x23   :  { %115 = vmatpush.msra.mxu0 %v26_v1  ;;  %135 = vmatpush.msra.mxu1 %v27_v2  ;;  %v208_v37 = vld [vmem:[%s774_s3 + $0xb8] sm:$0xff]  ;;  %v222_v39 = vld [vmem:[%s774_s3 + $0x128] sm:$0xff]  ;;  %v191_v40 = vld [vmem:[%s774_s3 + $0x30] sm:$0xff] }
  0x24   :  { %116 = vmatmul.f32.vlgmr.msra.gmra.mxu0 %v25_v60  ;;  %136 = vmatmul.f32.vlgmr.msra.gmra.mxu1 %v25_v60  ;;  %v207_v41 = vld [vmem:[%s774_s3 + $0xb0] sm:$0xff]  ;;  %v238_v42 = vld [vmem:[%s774_s3 + $0x1a8] sm:$0xff]  ;;  %v221_v43 = vld [vmem:[%s774_s3 + $0x120] sm:$0xff] }
  0x25   :  { %290 = vmatpush.msrb.mxu2 %v231_v3  ;;  %249 = vmatpush.msrb.mxu0 %v200_v4  ;;  %v190_v44 = vld [vmem:[%s774_s3 + $0x28] sm:$0xff]  ;;  %v237_v46 = vld [vmem:[%s774_s3 + $0x1a0] sm:$0xff]  ;;  %v220_v47 = vld [vmem:[%s774_s3 + $0x118] sm:$0xff] }
  0x26   :  { %269 = vmatpush.msrb.mxu1 %v216_v5  ;;  %310 = vmatpush.msrb.mxu3 %v247_v6  ;;  %v206_v45 = vld [vmem:[%s774_s3 + $0xa8] sm:$0xff]  ;;  %v189_v48 = vld [vmem:[%s774_s3 + $0x20] sm:$0xff]  ;;  %v219_v50 = vld [vmem:[%s774_s3 + $0x110] sm:$0xff] }
  0x27   :  { %291 = vmatpush.msrb.mxu2 %v230_v7  ;;  %250 = vmatpush.msrb.mxu0 %v199_v8  ;;  %v205_v49 = vld [vmem:[%s774_s3 + $0xa0] sm:$0xff]  ;;  %v236_v51 = vld [vmem:[%s774_s3 + $0x198] sm:$0xff]  ;;  %v218_v54 = vld [vmem:[%s774_s3 + $0x108] sm:$0xff] }
  0x28   :  { %270 = vmatpush.msrb.mxu1 %v215_v9  ;;  %311 = vmatpush.msrb.mxu3 %v246_v10  ;;  %v188_v52 = vld [vmem:[%s774_s3 + $0x18] sm:$0xff]  ;;  %v235_v55 = vld [vmem:[%s774_s3 + $0x190] sm:$0xff]  ;;  %v217_v58 = vld [vmem:[%s774_s3 + $0x100] sm:$0xff] }
  0x29   :  { %292 = vmatpush.msrb.mxu2 %v229_v11  ;;  %251 = vmatpush.msrb.mxu0 %v198_v12  ;;  %v204_v53 = vld [vmem:[%s774_s3 + $0x98] sm:$0xff]  ;;  %v187_v56 = vld [vmem:[%s774_s3 + $0x10] sm:$0xff]  ;;  %v234_v59 = vld [vmem:[%s774_s3 + $0x188] sm:$0xff] }
  0x2a   :  { %271 = vmatpush.msrb.mxu1 %v214_v13  ;;  %312 = vmatpush.msrb.mxu3 %v245_v14  ;;  %v203_v57 = vld [vmem:[%s774_s3 + $0x90] sm:$0xff]  ;;  %v186_v60 = vld [vmem:[%s774_s3 + $0x8] sm:$0xff]  ;;  %v233_v62 = vld [vmem:[%s774_s3 + $0x180] sm:$0xff] }
  0x2b   :  { %293 = vmatpush.msrb.mxu2 %v228_v15  ;;  %252 = vmatpush.msrb.mxu0 %v197_v16  ;;  %v202_v61 = vld [vmem:[%s774_s3 + $0x88] sm:$0xff]  ;;  %v185_v63 = vld [vmem:[%s774_s3] sm:$0xff] }
  0x2c   :  { %272 = vmatpush.msrb.mxu1 %v213_v17  ;;  %313 = vmatpush.msrb.mxu3 %v244_v18  ;;  %v201_v0 = vld [vmem:[%s774_s3 + $0x80] sm:$0xff] }
  0x2d   :  { %294 = vmatpush.msrb.mxu2 %v227_v19  ;;  %253 = vmatpush.msrb.mxu0 %v196_v20  ;;  %v90_v1 = vld [vmem:[%s775_s2] sm:$0xf] }
  0x2e   :  { %273 = vmatpush.msrb.mxu1 %v212_v21  ;;  %314 = vmatpush.msrb.mxu3 %v243_v22  ;;  %v92_v2 = vperm.slane %v90_v1, 0  ;;  %v93_v3 = vperm.slane %v90_v1, 1  ;;  %v94_v4 = vperm.slane %v90_v1, 2  ;;  %v95_v5 = vperm.slane %v90_v1, 3 }
  0x2f   :  { %295 = vmatpush.msrb.mxu2 %v226_v23  ;;  %254 = vmatpush.msrb.mxu0 %v195_v24  ;;  %v345_v24 = vld [vmem:[%s776_s4] ss:$0 sm:$0xff] }
  0x30   :  { %274 = vmatpush.msrb.mxu1 %v211_v25  ;;  %315 = vmatpush.msrb.mxu3 %v242_v26 }
  0x31   :  { %296 = vmatpush.msrb.mxu2 %v225_v27  ;;  %255 = vmatpush.msrb.mxu0 %v194_v28 }
  0x32   :  { %275 = vmatpush.msrb.mxu1 %v210_v29  ;;  %316 = vmatpush.msrb.mxu3 %v241_v30 }
  0x33   :  { %297 = vmatpush.msrb.mxu2 %v224_v31  ;;  %256 = vmatpush.msrb.mxu0 %v193_v32 }
  0x34   :  { %276 = vmatpush.msrb.mxu1 %v209_v33  ;;  %317 = vmatpush.msrb.mxu3 %v240_v34 }
  0x35   :  { %298 = vmatpush.msrb.mxu2 %v223_v35  ;;  %257 = vmatpush.msrb.mxu0 %v192_v36 }
  0x36   :  { %277 = vmatpush.msrb.mxu1 %v208_v37  ;;  %318 = vmatpush.msrb.mxu3 %v239_v38 }
  0x37   :  { %299 = vmatpush.msrb.mxu2 %v222_v39  ;;  %258 = vmatpush.msrb.mxu0 %v191_v40 }
  0x38   :  { %278 = vmatpush.msrb.mxu1 %v207_v41  ;;  %319 = vmatpush.msrb.mxu3 %v238_v42 }
  0x39   :  { %300 = vmatpush.msrb.mxu2 %v221_v43  ;;  %259 = vmatpush.msrb.mxu0 %v190_v44 }
  0x3a   :  { %279 = vmatpush.msrb.mxu1 %v206_v45  ;;  %320 = vmatpush.msrb.mxu3 %v237_v46 }
  0x3b   :  { %301 = vmatpush.msrb.mxu2 %v220_v47  ;;  %260 = vmatpush.msrb.mxu0 %v189_v48 }
  0x3c   :  { %280 = vmatpush.msrb.mxu1 %v205_v49  ;;  %321 = vmatpush.msrb.mxu3 %v236_v51 }
  0x3d   :  { %302 = vmatpush.msrb.mxu2 %v219_v50  ;;  %261 = vmatpush.msrb.mxu0 %v188_v52 }
  0x3e   :  { %281 = vmatpush.msrb.mxu1 %v204_v53  ;;  %322 = vmatpush.msrb.mxu3 %v235_v55 }
  0x3f   :  { %303 = vmatpush.msrb.mxu2 %v218_v54  ;;  %262 = vmatpush.msrb.mxu0 %v187_v56 }
  0x40   :  { %282 = vmatpush.msrb.mxu1 %v203_v57  ;;  %323 = vmatpush.msrb.mxu3 %v234_v59 }
  0x41   :  { %304 = vmatpush.msrb.mxu2 %v217_v58  ;;  %263 = vmatpush.msrb.mxu0 %v186_v60 }
  0x42   :  { %283 = vmatpush.msrb.mxu1 %v202_v61  ;;  %324 = vmatpush.msrb.mxu3 %v233_v62 }
  0x43   :  { %264 = vmatpush.msrb.mxu0 %v185_v63 }
  0x44   :  { %284 = vmatpush.msrb.mxu1 %v201_v0 }
  0xa1   :  { %v117_v6 = vpop.f32.mrf.mxu0  ;;  %v137_v7 = vpop.f32.mrf.mxu1 }
  0xa2   :  { %v118_v8 = vadd.f32 %v117_v6, %v92_v2  ;;  %v138_v9 = vadd.f32 %v137_v7, %v93_v3 }
  0xa4   :  { %v157_v10 = vpop.f32.mrf.mxu2  ;;  %v177_v11 = vpop.f32.mrf.mxu3  ;;  %v180_v14 = vmax.f32 %v118_v8, 0.0  ;;  %v181_v15 = vmax.f32 %v138_v9, 0.0 }
  0xa5   :  { %v158_v12 = vadd.f32 %v157_v10, %v94_v4  ;;  %v178_v13 = vadd.f32 %v177_v11, %v95_v5 }
  0xa6   :  { %265 = vmatmul.f32.vlgmr.msrb.gmra.mxu0 %v180_v14  ;;  %285 = vmatmul.f32.vlgmr.msrb.gmra.mxu1 %v181_v15 }
  0xa7   :  { %v182_v16 = vmax.f32 %v158_v12, 0.0  ;;  %v183_v17 = vmax.f32 %v178_v13, 0.0 }
  0xa9   :  { %305 = vmatmul.f32.vlgmr.msrb.gmra.mxu2 %v182_v16  ;;  %325 = vmatmul.f32.vlgmr.msrb.gmra.mxu3 %v183_v17 }
 0x123   :  { %v266_v18 = vpop.f32.mrf.mxu0  ;;  %v286_v19 = vpop.f32.mrf.mxu1 }
 0x124   :  { %v287_v20 = vadd.f32 %v286_v19, %v266_v18 }
 0x12c   :  { %v306_v21 = vpop.f32.mrf.mxu2  ;;  %v326_v22 = vpop.f32.mrf.mxu3 }
 0x12d   :  { %v307_v23 = vadd.f32 %v306_v21, %v287_v20 }
 0x12f   :  { %v327_v25 = vadd.f32 %v326_v22, %v307_v23 }
 0x131   :  { %v339_v26 = vadd.f32 %v345_v24, %v327_v25 }
 0x133   :  { %340 = vst [vmem:[%s777_s5] sm:$0xff] %v339_v26 }

// kernel: tile.19
= control target key start
LH: loop header
LB: loop body
LE: loop exit
PB: predicated region body
PF: predicated region fallthrough
CT: control target
= control target key end

     0   :  { %vm7_vm0 = vcmask 523264   ;;  %vm13_vm1 = vcmask 1048064   ;;  %s39_s0 = inlined_call_operand.vmem [shape: f32[2,64], index: 0, kind: input, shape index: {}]   ;;  %s40_s1 = inlined_call_operand.vmem [shape: f32[1,128], index: 1, kind: output, shape index: {}]  }
   0x1   :  { %v4_v0 = vld [vmem:[%s39_s0] sm:$0x3]  ;;  %s22_s0 = smov 64  }
   0x2   :  { %5 = vst [vmem:[#allocation1] sm:$0x3] %v4_v0 }
   0x9   :  { %v10_v1 = vld [vmem:[#allocation1 + $0x1] sm:$0x1]   ;;  %v6_v2 = vld [vmem:[#allocation1] sm:$0x1]  }
   0xa   :  { %11 = vrot.lane.b32.xlu0 %v10_v1, %s22_s0  ;;  %8 = vst.msk [vmem:[#allocation0] sm:$0x1] %vm7_vm0, %v6_v2  }
  0x7c   :  { %v12_v3 = vpop.permute.xlu0 %11  }
  0x7d   :  { %14 = vst.msk [vmem:[#allocation0] sm:$0x1] %vm13_vm1, %v12_v3  }
  0x84   :  { %v17_v4 = vld [vmem:[#allocation0] sm:$0x1] }
  0x85   :  { %20 = vst [vmem:[%s40_s1] sm:$0x1] %v17_v4 }

// kernel: tile.17
= control target key start
LH: loop header
LB: loop body
LE: loop exit
PB: predicated region body
PF: predicated region fallthrough
CT: control target
= control target key end

     0   :  { %s22_s0 = inlined_call_operand.vmem [shape: f32[64], index: 0, kind: input, shape index: {}]   ;;  %s23_s1 = inlined_call_operand.vmem [shape: f32[2,64], index: 1, kind: output, shape index: {}]  }
   0x1   :  { %v4_v0 = vld [vmem:[%s22_s0] ss:$0 sm:$0xff] }
   0x2   :  { %5 = vst [vmem:[%s23_s1] sm:$0x3] %v4_v0 }

// kernel: _pwff_impl.1
= control target key start
LH: loop header
LB: loop body
LE: loop exit
PB: predicated region body
PF: predicated region fallthrough
CT: control target
= control target key end

     0   :  { %s772_s1 = inlined_call_operand.vmem [shape: f32[128,512], index: 1, kind: input, shape index: {}]   ;;  %s773_s0 = inlined_call_operand.vmem [shape: f32[8,128], index: 0, kind: input, shape index: {}]   ;;  %s774_s3 = inlined_call_operand.vmem [shape: f32[512,128], index: 3, kind: input, shape index: {}]   ;;  %s775_s2 = inlined_call_operand.vmem [shape: f32[1,512], index: 2, kind: input, shape index: {}]   ;;  %s776_s4 = inlined_call_operand.vmem [shape: f32[1,128], index: 4, kind: input, shape index: {}]   ;;  %s777_s5 = inlined_call_operand.vmem [shape: f32[8,128], index: 5, kind: output, shape index: {}]  }
   0x1   :  { %v88_v0 = vld [vmem:[%s772_s1 + $0x1f0] sm:$0xff]  ;;  %v89_v2 = vld [vmem:[%s772_s1 + $0x1f8] sm:$0xff]  ;;  %v86_v7 = vld [vmem:[%s772_s1 + $0x1e0] sm:$0xff] }
   0x2   :  { %v84_v1 = vld [vmem:[%s772_s1 + $0x1d0] sm:$0xff]  ;;  %140 = vmatpush.msra.mxu2 %v88_v0  ;;  %160 = vmatpush.msra.mxu3 %v89_v2  ;;  %v85_v3 = vld [vmem:[%s772_s1 + $0x1d8] sm:$0xff]  ;;  %v87_v8 = vld [vmem:[%s772_s1 + $0x1e8] sm:$0xff] }
   0x3   :  { %v80_v4 = vld [vmem:[%s772_s1 + $0x1b0] sm:$0xff]  ;;  %v81_v5 = vld [vmem:[%s772_s1 + $0x1b8] sm:$0xff]  ;;  %100 = vmatpush.msra.mxu0 %v86_v7  ;;  %120 = vmatpush.msra.mxu1 %v87_v8  ;;  %v82_v10 = vld [vmem:[%s772_s1 + $0x1c0] sm:$0xff] }
   0x4   :  { %141 = vmatpush.msra.mxu2 %v84_v1  ;;  %161 = vmatpush.msra.mxu3 %v85_v3  ;;  %v76_v6 = vld [vmem:[%s772_s1 + $0x190] sm:$0xff]  ;;  %v77_v9 = vld [vmem:[%s772_s1 + $0x198] sm:$0xff]  ;;  %v83_v11 = vld [vmem:[%s772_s1 + $0x1c8] sm:$0xff] }
   0x5   :  { %v78_v12 = vld [vmem:[%s772_s1 + $0x1a0] sm:$0xff]  ;;  %v72_v13 = vld [vmem:[%s772_s1 + $0x170] sm:$0xff]  ;;  %v73_v14 = vld [vmem:[%s772_s1 + $0x178] sm:$0xff]  ;;  %101 = vmatpush.msra.mxu0 %v82_v10  ;;  %121 = vmatpush.msra.mxu1 %v83_v11 }
   0x6   :  { %142 = vmatpush.msra.mxu2 %v80_v4  ;;  %162 = vmatpush.msra.mxu3 %v81_v5  ;;  %v79_v15 = vld [vmem:[%s772_s1 + $0x1a8] sm:$0xff]  ;;  %v74_v16 = vld [vmem:[%s772_s1 + $0x180] sm:$0xff]  ;;  %v68_v18 = vld [vmem:[%s772_s1 + $0x150] sm:$0xff] }
   0x7   :  { %v75_v17 = vld [vmem:[%s772_s1 + $0x188] sm:$0xff]  ;;  %v69_v19 = vld [vmem:[%s772_s1 + $0x158] sm:$0xff]  ;;  %102 = vmatpush.msra.mxu0 %v78_v12  ;;  %122 = vmatpush.msra.mxu1 %v79_v15  ;;  %v70_v20 = vld [vmem:[%s772_s1 + $0x160] sm:$0xff] }
   0x8   :  { %143 = vmatpush.msra.mxu2 %v76_v6  ;;  %163 = vmatpush.msra.mxu3 %v77_v9  ;;  %v71_v21 = vld [vmem:[%s772_s1 + $0x168] sm:$0xff]  ;;  %v64_v22 = vld [vmem:[%s772_s1 + $0x130] sm:$0xff]  ;;  %v65_v23 = vld [vmem:[%s772_s1 + $0x138] sm:$0xff] }
   0x9   :  { %103 = vmatpush.msra.mxu0 %v74_v16  ;;  %123 = vmatpush.msra.mxu1 %v75_v17  ;;  %v66_v24 = vld [vmem:[%s772_s1 + $0x140] sm:$0xff]  ;;  %v67_v25 = vld [vmem:[%s772_s1 + $0x148] sm:$0xff]  ;;  %v60_v26 = vld [vmem:[%s772_s1 + $0x110] sm:$0xff] }
   0xa   :  { %144 = vmatpush.msra.mxu2 %v72_v13  ;;  %164 = vmatpush.msra.mxu3 %v73_v14  ;;  %v61_v27 = vld [vmem:[%s772_s1 + $0x118] sm:$0xff]  ;;  %v62_v28 = vld [vmem:[%s772_s1 + $0x120] sm:$0xff]  ;;  %v63_v29 = vld [vmem:[%s772_s1 + $0x128] sm:$0xff] }
   0xb   :  { %104 = vmatpush.msra.mxu0 %v70_v20  ;;  %124 = vmatpush.msra.mxu1 %v71_v21  ;;  %v56_v30 = vld [vmem:[%s772_s1 + $0xf0] sm:$0xff]  ;;  %v57_v31 = vld [vmem:[%s772_s1 + $0xf8] sm:$0xff]  ;;  %v58_v32 = vld [vmem:[%s772_s1 + $0x100] sm:$0xff] }
   0xc   :  { %145 = vmatpush.msra.mxu2 %v68_v18  ;;  %165 = vmatpush.msra.mxu3 %v69_v19  ;;  %v59_v33 = vld [vmem:[%s772_s1 + $0x108] sm:$0xff]  ;;  %v52_v34 = vld [vmem:[%s772_s1 + $0xd0] sm:$0xff]  ;;  %v53_v35 = vld [vmem:[%s772_s1 + $0xd8] sm:$0xff] }
   0xd   :  { %105 = vmatpush.msra.mxu0 %v66_v24  ;;  %125 = vmatpush.msra.mxu1 %v67_v25  ;;  %v54_v36 = vld [vmem:[%s772_s1 + $0xe0] sm:$0xff]  ;;  %v55_v37 = vld [vmem:[%s772_s1 + $0xe8] sm:$0xff]  ;;  %v48_v38 = vld [vmem:[%s772_s1 + $0xb0] sm:$0xff] }
   0xe   :  { %146 = vmatpush.msra.mxu2 %v64_v22  ;;  %166 = vmatpush.msra.mxu3 %v65_v23  ;;  %v49_v39 = vld [vmem:[%s772_s1 + $0xb8] sm:$0xff]  ;;  %v50_v40 = vld [vmem:[%s772_s1 + $0xc0] sm:$0xff]  ;;  %v51_v41 = vld [vmem:[%s772_s1 + $0xc8] sm:$0xff] }
   0xf   :  { %106 = vmatpush.msra.mxu0 %v62_v28  ;;  %126 = vmatpush.msra.mxu1 %v63_v29  ;;  %v44_v42 = vld [vmem:[%s772_s1 + $0x90] sm:$0xff]  ;;  %v45_v43 = vld [vmem:[%s772_s1 + $0x98] sm:$0xff]  ;;  %v46_v44 = vld [vmem:[%s772_s1 + $0xa0] sm:$0xff] }
  0x10   :  { %147 = vmatpush.msra.mxu2 %v60_v26  ;;  %167 = vmatpush.msra.mxu3 %v61_v27  ;;  %v47_v45 = vld [vmem:[%s772_s1 + $0xa8] sm:$0xff]  ;;  %v40_v46 = vld [vmem:[%s772_s1 + $0x70] sm:$0xff]  ;;  %v41_v47 = vld [vmem:[%s772_s1 + $0x78] sm:$0xff] }
  0x11   :  { %107 = vmatpush.msra.mxu0 %v58_v32  ;;  %127 = vmatpush.msra.mxu1 %v59_v33  ;;  %v42_v48 = vld [vmem:[%s772_s1 + $0x80] sm:$0xff]  ;;  %v43_v49 = vld [vmem:[%s772_s1 + $0x88] sm:$0xff]  ;;  %v36_v50 = vld [vmem:[%s772_s1 + $0x50] sm:$0xff] }
  0x12   :  { %148 = vmatpush.msra.mxu2 %v56_v30  ;;  %168 = vmatpush.msra.mxu3 %v57_v31  ;;  %v37_v51 = vld [vmem:[%s772_s1 + $0x58] sm:$0xff]  ;;  %v38_v52 = vld [vmem:[%s772_s1 + $0x60] sm:$0xff]  ;;  %v39_v53 = vld [vmem:[%s772_s1 + $0x68] sm:$0xff] }
  0x13   :  { %108 = vmatpush.msra.mxu0 %v54_v36  ;;  %128 = vmatpush.msra.mxu1 %v55_v37  ;;  %v32_v54 = vld [vmem:[%s772_s1 + $0x30] sm:$0xff]  ;;  %v33_v55 = vld [vmem:[%s772_s1 + $0x38] sm:$0xff]  ;;  %v34_v56 = vld [vmem:[%s772_s1 + $0x40] sm:$0xff] }
  0x14   :  { %149 = vmatpush.msra.mxu2 %v52_v34  ;;  %169 = vmatpush.msra.mxu3 %v53_v35  ;;  %v35_v57 = vld [vmem:[%s772_s1 + $0x48] sm:$0xff]  ;;  %v28_v58 = vld [vmem:[%s772_s1 + $0x10] sm:$0xff]  ;;  %v29_v59 = vld [vmem:[%s772_s1 + $0x18] sm:$0xff] }
  0x15   :  { %109 = vmatpush.msra.mxu0 %v50_v40  ;;  %129 = vmatpush.msra.mxu1 %v51_v41  ;;  %v25_v60 = vld [vmem:[%s773_s0] sm:$0xff]  ;;  %v31_v62 = vld [vmem:[%s772_s1 + $0x28] sm:$0xff]  ;;  %v232_v63 = vld [vmem:[%s774_s3 + $0x178] sm:$0xff] }
  0x16   :  { %150 = vmatpush.msra.mxu2 %v48_v38  ;;  %170 = vmatpush.msra.mxu3 %v49_v39  ;;  %v30_v61 = vld [vmem:[%s772_s1 + $0x20] sm:$0xff]  ;;  %v248_v0 = vld [vmem:[%s774_s3 + $0x1f8] sm:$0xff]  ;;  %v27_v2 = vld [vmem:[%s772_s1 + $0x8] sm:$0xff] }
  0x17   :  { %110 = vmatpush.msra.mxu0 %v46_v44  ;;  %130 = vmatpush.msra.mxu1 %v47_v45  ;;  %v26_v1 = vld [vmem:[%s772_s1] sm:$0xff]  ;;  %v231_v3 = vld [vmem:[%s774_s3 + $0x170] sm:$0xff]  ;;  %v200_v4 = vld [vmem:[%s774_s3 + $0x78] sm:$0xff] }
  0x18   :  { %151 = vmatpush.msra.mxu2 %v44_v42  ;;  %171 = vmatpush.msra.mxu3 %v45_v43  ;;  %v216_v5 = vld [vmem:[%s774_s3 + $0xf8] sm:$0xff]  ;;  %v247_v6 = vld [vmem:[%s774_s3 + $0x1f0] sm:$0xff]  ;;  %v230_v7 = vld [vmem:[%s774_s3 + $0x168] sm:$0xff] }
  0x19   :  { %111 = vmatpush.msra.mxu0 %v42_v48  ;;  %131 = vmatpush.msra.mxu1 %v43_v49  ;;  %v199_v8 = vld [vmem:[%s774_s3 + $0x70] sm:$0xff]  ;;  %v246_v10 = vld [vmem:[%s774_s3 + $0x1e8] sm:$0xff]  ;;  %v229_v11 = vld [vmem:[%s774_s3 + $0x160] sm:$0xff] }
  0x1a   :  { %152 = vmatpush.msra.mxu2 %v40_v46  ;;  %172 = vmatpush.msra.mxu3 %v41_v47  ;;  %v215_v9 = vld [vmem:[%s774_s3 + $0xf0] sm:$0xff]  ;;  %v198_v12 = vld [vmem:[%s774_s3 + $0x68] sm:$0xff]  ;;  %v245_v14 = vld [vmem:[%s774_s3 + $0x1e0] sm:$0xff] }
  0x1b   :  { %112 = vmatpush.msra.mxu0 %v38_v52  ;;  %132 = vmatpush.msra.mxu1 %v39_v53  ;;  %v214_v13 = vld [vmem:[%s774_s3 + $0xe8] sm:$0xff]  ;;  %v228_v15 = vld [vmem:[%s774_s3 + $0x158] sm:$0xff]  ;;  %v197_v16 = vld [vmem:[%s774_s3 + $0x60] sm:$0xff] }
  0x1c   :  { %153 = vmatpush.msra.mxu2 %v36_v50  ;;  %173 = vmatpush.msra.mxu3 %v37_v51  ;;  %v213_v17 = vld [vmem:[%s774_s3 + $0xe0] sm:$0xff]  ;;  %v244_v18 = vld [vmem:[%s774_s3 + $0x1d8] sm:$0xff]  ;;  %v227_v19 = vld [vmem:[%s774_s3 + $0x150] sm:$0xff] }
  0x1d   :  { %113 = vmatpush.msra.mxu0 %v34_v56  ;;  %133 = vmatpush.msra.mxu1 %v35_v57  ;;  %v196_v20 = vld [vmem:[%s774_s3 + $0x58] sm:$0xff]  ;;  %v243_v22 = vld [vmem:[%s774_s3 + $0x1d0] sm:$0xff]  ;;  %v226_v23 = vld [vmem:[%s774_s3 + $0x148] sm:$0xff] }
  0x1e   :  { %154 = vmatpush.msra.mxu2 %v32_v54  ;;  %174 = vmatpush.msra.mxu3 %v33_v55  ;;  %v212_v21 = vld [vmem:[%s774_s3 + $0xd8] sm:$0xff]  ;;  %v195_v24 = vld [vmem:[%s774_s3 + $0x50] sm:$0xff]  ;;  %v242_v26 = vld [vmem:[%s774_s3 + $0x1c8] sm:$0xff] }
  0x1f   :  { %114 = vmatpush.msra.mxu0 %v30_v61  ;;  %134 = vmatpush.msra.mxu1 %v31_v62  ;;  %v211_v25 = vld [vmem:[%s774_s3 + $0xd0] sm:$0xff]  ;;  %v225_v27 = vld [vmem:[%s774_s3 + $0x140] sm:$0xff]  ;;  %v194_v28 = vld [vmem:[%s774_s3 + $0x48] sm:$0xff] }
  0x20   :  { %155 = vmatpush.msra.mxu2 %v28_v58  ;;  %175 = vmatpush.msra.mxu3 %v29_v59  ;;  %v210_v29 = vld [vmem:[%s774_s3 + $0xc8] sm:$0xff]  ;;  %v241_v30 = vld [vmem:[%s774_s3 + $0x1c0] sm:$0xff]  ;;  %v224_v31 = vld [vmem:[%s774_s3 + $0x138] sm:$0xff] }
  0x21   :  { %156 = vmatmul.f32.vlgmr.msra.gmra.mxu2 %v25_v60  ;;  %176 = vmatmul.f32.vlgmr.msra.gmra.mxu3 %v25_v60  ;;  %v193_v32 = vld [vmem:[%s774_s3 + $0x40] sm:$0xff]  ;;  %v240_v34 = vld [vmem:[%s774_s3 + $0x1b8] sm:$0xff]  ;;  %v223_v35 = vld [vmem:[%s774_s3 + $0x130] sm:$0xff] }
  0x22   :  { %289 = vmatpush.msrb.mxu2 %v232_v63  ;;  %309 = vmatpush.msrb.mxu3 %v248_v0  ;;  %v209_v33 = vld [vmem:[%s774_s3 + $0xc0] sm:$0xff]  ;;  %v192_v36 = vld [vmem:[%s774_s3 + $0x38] sm:$0xff]  ;;  %v239_v38 = vld [vmem:[%s774_s3 + $0x1b0] sm:$0xff] }
  0x23   :  { %115 = vmatpush.msra.mxu0 %v26_v1  ;;  %135 = vmatpush.msra.mxu1 %v27_v2  ;;  %v208_v37 = vld [vmem:[%s774_s3 + $0xb8] sm:$0xff]  ;;  %v222_v39 = vld [vmem:[%s774_s3 + $0x128] sm:$0xff]  ;;  %v191_v40 = vld [vmem:[%s774_s3 + $0x30] sm:$0xff] }
  0x24   :  { %116 = vmatmul.f32.vlgmr.msra.gmra.mxu0 %v25_v60  ;;  %136 = vmatmul.f32.vlgmr.msra.gmra.mxu1 %v25_v60  ;;  %v207_v41 = vld [vmem:[%s774_s3 + $0xb0] sm:$0xff]  ;;  %v238_v42 = vld [vmem:[%s774_s3 + $0x1a8] sm:$0xff]  ;;  %v221_v43 = vld [vmem:[%s774_s3 + $0x120] sm:$0xff] }
  0x25   :  { %290 = vmatpush.msrb.mxu2 %v231_v3  ;;  %249 = vmatpush.msrb.mxu0 %v200_v4  ;;  %v190_v44 = vld [vmem:[%s774_s3 + $0x28] sm:$0xff]  ;;  %v237_v46 = vld [vmem:[%s774_s3 + $0x1a0] sm:$0xff]  ;;  %v220_v47 = vld [vmem:[%s774_s3 + $0x118] sm:$0xff] }
  0x26   :  { %269 = vmatpush.msrb.mxu1 %v216_v5  ;;  %310 = vmatpush.msrb.mxu3 %v247_v6  ;;  %v206_v45 = vld [vmem:[%s774_s3 + $0xa8] sm:$0xff]  ;;  %v189_v48 = vld [vmem:[%s774_s3 + $0x20] sm:$0xff]  ;;  %v219_v50 = vld [vmem:[%s774_s3 + $0x110] sm:$0xff] }
  0x27   :  { %291 = vmatpush.msrb.mxu2 %v230_v7  ;;  %250 = vmatpush.msrb.mxu0 %v199_v8  ;;  %v205_v49 = vld [vmem:[%s774_s3 + $0xa0] sm:$0xff]  ;;  %v236_v51 = vld [vmem:[%s774_s3 + $0x198] sm:$0xff]  ;;  %v218_v54 = vld [vmem:[%s774_s3 + $0x108] sm:$0xff] }
  0x28   :  { %270 = vmatpush.msrb.mxu1 %v215_v9  ;;  %311 = vmatpush.msrb.mxu3 %v246_v10  ;;  %v188_v52 = vld [vmem:[%s774_s3 + $0x18] sm:$0xff]  ;;  %v235_v55 = vld [vmem:[%s774_s3 + $0x190] sm:$0xff]  ;;  %v217_v58 = vld [vmem:[%s774_s3 + $0x100] sm:$0xff] }
  0x29   :  { %292 = vmatpush.msrb.mxu2 %v229_v11  ;;  %251 = vmatpush.msrb.mxu0 %v198_v12  ;;  %v204_v53 = vld [vmem:[%s774_s3 + $0x98] sm:$0xff]  ;;  %v187_v56 = vld [vmem:[%s774_s3 + $0x10] sm:$0xff]  ;;  %v234_v59 = vld [vmem:[%s774_s3 + $0x188] sm:$0xff] }
  0x2a   :  { %271 = vmatpush.msrb.mxu1 %v214_v13  ;;  %312 = vmatpush.msrb.mxu3 %v245_v14  ;;  %v203_v57 = vld [vmem:[%s774_s3 + $0x90] sm:$0xff]  ;;  %v186_v60 = vld [vmem:[%s774_s3 + $0x8] sm:$0xff]  ;;  %v233_v62 = vld [vmem:[%s774_s3 + $0x180] sm:$0xff] }
  0x2b   :  { %293 = vmatpush.msrb.mxu2 %v228_v15  ;;  %252 = vmatpush.msrb.mxu0 %v197_v16  ;;  %v202_v61 = vld [vmem:[%s774_s3 + $0x88] sm:$0xff]  ;;  %v185_v63 = vld [vmem:[%s774_s3] sm:$0xff] }
  0x2c   :  { %272 = vmatpush.msrb.mxu1 %v213_v17  ;;  %313 = vmatpush.msrb.mxu3 %v244_v18  ;;  %v201_v0 = vld [vmem:[%s774_s3 + $0x80] sm:$0xff] }
  0x2d   :  { %294 = vmatpush.msrb.mxu2 %v227_v19  ;;  %253 = vmatpush.msrb.mxu0 %v196_v20  ;;  %v90_v1 = vld [vmem:[%s775_s2] sm:$0xf] }
  0x2e   :  { %273 = vmatpush.msrb.mxu1 %v212_v21  ;;  %314 = vmatpush.msrb.mxu3 %v243_v22  ;;  %v92_v2 = vperm.slane %v90_v1, 0  ;;  %v93_v3 = vperm.slane %v90_v1, 1  ;;  %v94_v4 = vperm.slane %v90_v1, 2  ;;  %v95_v5 = vperm.slane %v90_v1, 3 }
  0x2f   :  { %295 = vmatpush.msrb.mxu2 %v226_v23  ;;  %254 = vmatpush.msrb.mxu0 %v195_v24  ;;  %v345_v24 = vld [vmem:[%s776_s4] ss:$0 sm:$0xff] }
  0x30   :  { %274 = vmatpush.msrb.mxu1 %v211_v25  ;;  %315 = vmatpush.msrb.mxu3 %v242_v26 }
  0x31   :  { %296 = vmatpush.msrb.mxu2 %v225_v27  ;;  %255 = vmatpush.msrb.mxu0 %v194_v28 }
  0x32   :  { %275 = vmatpush.msrb.mxu1 %v210_v29  ;;  %316 = vmatpush.msrb.mxu3 %v241_v30 }
  0x33   :  { %297 = vmatpush.msrb.mxu2 %v224_v31  ;;  %256 = vmatpush.msrb.mxu0 %v193_v32 }
  0x34   :  { %276 = vmatpush.msrb.mxu1 %v209_v33  ;;  %317 = vmatpush.msrb.mxu3 %v240_v34 }
  0x35   :  { %298 = vmatpush.msrb.mxu2 %v223_v35  ;;  %257 = vmatpush.msrb.mxu0 %v192_v36 }
  0x36   :  { %277 = vmatpush.msrb.mxu1 %v208_v37  ;;  %318 = vmatpush.msrb.mxu3 %v239_v38 }
  0x37   :  { %299 = vmatpush.msrb.mxu2 %v222_v39  ;;  %258 = vmatpush.msrb.mxu0 %v191_v40 }
  0x38   :  { %278 = vmatpush.msrb.mxu1 %v207_v41  ;;  %319 = vmatpush.msrb.mxu3 %v238_v42 }
  0x39   :  { %300 = vmatpush.msrb.mxu2 %v221_v43  ;;  %259 = vmatpush.msrb.mxu0 %v190_v44 }
  0x3a   :  { %279 = vmatpush.msrb.mxu1 %v206_v45  ;;  %320 = vmatpush.msrb.mxu3 %v237_v46 }
  0x3b   :  { %301 = vmatpush.msrb.mxu2 %v220_v47  ;;  %260 = vmatpush.msrb.mxu0 %v189_v48 }
  0x3c   :  { %280 = vmatpush.msrb.mxu1 %v205_v49  ;;  %321 = vmatpush.msrb.mxu3 %v236_v51 }
  0x3d   :  { %302 = vmatpush.msrb.mxu2 %v219_v50  ;;  %261 = vmatpush.msrb.mxu0 %v188_v52 }
  0x3e   :  { %281 = vmatpush.msrb.mxu1 %v204_v53  ;;  %322 = vmatpush.msrb.mxu3 %v235_v55 }
  0x3f   :  { %303 = vmatpush.msrb.mxu2 %v218_v54  ;;  %262 = vmatpush.msrb.mxu0 %v187_v56 }
  0x40   :  { %282 = vmatpush.msrb.mxu1 %v203_v57  ;;  %323 = vmatpush.msrb.mxu3 %v234_v59 }
  0x41   :  { %304 = vmatpush.msrb.mxu2 %v217_v58  ;;  %263 = vmatpush.msrb.mxu0 %v186_v60 }
  0x42   :  { %283 = vmatpush.msrb.mxu1 %v202_v61  ;;  %324 = vmatpush.msrb.mxu3 %v233_v62 }
  0x43   :  { %264 = vmatpush.msrb.mxu0 %v185_v63 }
  0x44   :  { %284 = vmatpush.msrb.mxu1 %v201_v0 }
  0xa1   :  { %v117_v6 = vpop.f32.mrf.mxu0  ;;  %v137_v7 = vpop.f32.mrf.mxu1 }
  0xa2   :  { %v118_v8 = vadd.f32 %v117_v6, %v92_v2  ;;  %v138_v9 = vadd.f32 %v137_v7, %v93_v3 }
  0xa4   :  { %v157_v10 = vpop.f32.mrf.mxu2  ;;  %v177_v11 = vpop.f32.mrf.mxu3  ;;  %v180_v14 = vmax.f32 %v118_v8, 0.0  ;;  %v181_v15 = vmax.f32 %v138_v9, 0.0 }
  0xa5   :  { %v158_v12 = vadd.f32 %v157_v10, %v94_v4  ;;  %v178_v13 = vadd.f32 %v177_v11, %v95_v5 }
  0xa6   :  { %265 = vmatmul.f32.vlgmr.msrb.gmra.mxu0 %v180_v14  ;;  %285 = vmatmul.f32.vlgmr.msrb.gmra.mxu1 %v181_v15 }
  0xa7   :  { %v182_v16 = vmax.f32 %v158_v12, 0.0  ;;  %v183_v17 = vmax.f32 %v178_v13, 0.0 }
  0xa9   :  { %305 = vmatmul.f32.vlgmr.msrb.gmra.mxu2 %v182_v16  ;;  %325 = vmatmul.f32.vlgmr.msrb.gmra.mxu3 %v183_v17 }
 0x123   :  { %v266_v18 = vpop.f32.mrf.mxu0  ;;  %v286_v19 = vpop.f32.mrf.mxu1 }
 0x124   :  { %v287_v20 = vadd.f32 %v286_v19, %v266_v18 }
 0x12c   :  { %v306_v21 = vpop.f32.mrf.mxu2  ;;  %v326_v22 = vpop.f32.mrf.mxu3 }
 0x12d   :  { %v307_v23 = vadd.f32 %v306_v21, %v287_v20 }
 0x12f   :  { %v327_v25 = vadd.f32 %v326_v22, %v307_v23 }
 0x131   :  { %v339_v26 = vadd.f32 %v345_v24, %v327_v25 }
 0x133   :  { %340 = vst [vmem:[%s777_s5] sm:$0xff] %v339_v26 }

</bundles_post_ra>
